<compile_context>
chip_gen: v5e
topology: v5e:2x2
jax: 0.10.0
libtpu: 0.0.40
codegen_flags: <defaults>
</compile_context>

<pallas_src>
import jax
import jax.numpy as jnp
from jax.experimental import pallas as pl
from jax.experimental.pallas import tpu as pltpu


def _focus_conv_bn_mish_kernel(x_ref, w_ref, b_ref, o_ref):
    # x_ref: (C4, TP)  space-to-depth input slab, pixels on lanes
    # w_ref: (C2, C4)  f32 1x1-conv weight with BN scale pre-folded
    # b_ref: (C2, 1)   f32 folded BN bias (broadcast over lanes)
    # o_ref: (C2, TP)  output slab, directly in NCHW layout (lane-dense stores)
    x = x_ref[...]
    if x.dtype != jnp.float32:
        x = x.astype(jnp.float32)  # in-register promotion; keeps the dot full precision
    y = jnp.dot(w_ref[...], x, preferred_element_type=jnp.float32)
    y = y + b_ref[...]
    # Mish(y) = y * tanh(softplus(y)) = y * (u^2 - 1) / (u^2 + 1), u = 1 + e^y.
    # Clamping the exp argument at 20 keeps u^2 finite; for y >= 20 the factor
    # is 1.0 in f32 anyway, so that side stays exact.  (For y roughly in
    # [-88, -17], 1 + e^y rounds to 1.0 and the kernel returns exactly 0 while
    # true Mish ~ y*e^y, an absolute error below ~1e-6 -- accepted.)
    e = jnp.exp(jnp.minimum(y, 20.0))
    u = 1.0 + e
    u2 = u * u
    # Approximate reciprocal stays on the EUP slot; an exact divide would add
    # VPU refinement ops to the per-element epilogue.
    t = (u2 - 1.0) * pl.reciprocal(u2 + 1.0, approx=True)
    o_ref[...] = (y * t).astype(o_ref.dtype)


def _round_up(v, m):
    return -(-v // m) * m


def _pick_tile(P, target_tp, per_px_bytes):
    """Pick the pixel tile.

    Prefer a multiple of 128 that divides P exactly (no pad and no post-kernel
    output slice -- the output is the dominant HBM stream) as long as each grid
    step still moves >= ~1 MiB so the ~0.35 us per-step overhead stays
    amortized.  Otherwise fall back to a padded tile at the target size.
    Returns (tile, padded_P).
    """
    if P % 128 == 0:
        q = P // 128
        tp = max(128 * d for d in range(1, q + 1) if q % d == 0 and 128 * d <= target_tp)
        if tp == P or tp * per_px_bytes >= (1 << 20):
            return tp, P
    tp = min(target_tp, _round_up(P, 128))
    return tp, _round_up(P, tp)


def focus_forward(x, conv_weight, bn_gamma, bn_beta, bn_mean, bn_var, eps=1e-5,
                  tile_p=None, compute_dtype=None, out_dtype=None):
    """Focus.forward: x is NCHW; conv_weight is (C2, 4*C1, 1, 1); conv has no bias.

    compute_dtype controls the activation stream fed to the kernel (pass
    jnp.bfloat16 to halve input HBM traffic); out_dtype defaults to
    compute_dtype so the (dominant) output stream is halved too.  The matmul
    accumulates in f32 and the BN+Mish epilogue is f32 regardless.
    """
    N, C1, H, W = x.shape
    C2 = conv_weight.shape[0]
    H2, W2 = H // 2, W // 2
    C4 = 4 * C1
    compute_dtype = jnp.dtype(x.dtype if compute_dtype is None else compute_dtype)
    out_dtype = compute_dtype if out_dtype is None else jnp.dtype(out_dtype)

    # --- space-to-depth (Focus slicing/concat), quadrant order matches PyTorch ---
    # Stays in NCHW: (N, 4*C1, H2, W2); XLA fuses slices+concat+reshape+cast+pad
    # into a single pass over the activation.
    # TODO(synk): fuse this pre-pass into the kernel (strided DMA per quadrant or
    # even/odd-row GEMM restructuring) to drop one extra write+read of the input.
    xs = jnp.concatenate(
        [x[..., ::2, ::2], x[..., 1::2, ::2], x[..., ::2, 1::2], x[..., 1::2, 1::2]],
        axis=1,
    )

    P = H2 * W2
    xs = xs.reshape(N, C4, P).astype(compute_dtype)

    # Tile sizing: target ~4 MiB of HBM traffic per grid step; double-buffered
    # VMEM footprint is then ~8 MiB, comfortably inside v5e/v6e/v7x budgets.
    in_bytes = jnp.dtype(compute_dtype).itemsize
    out_bytes = jnp.dtype(out_dtype).itemsize
    per_px = C4 * in_bytes + C2 * out_bytes
    if tile_p is None:
        target_tp = min(32768, max(128, ((4 << 20) // per_px) // 128 * 128))
    else:
        assert tile_p % 128 == 0, "pixel tile must be a multiple of the lane width"
        target_tp = tile_p
    tp, Pp = _pick_tile(P, target_tp, per_px)
    if Pp != P:
        xs = jnp.pad(xs, ((0, 0), (0, 0), (0, Pp - P)))

    # Fold eval-mode BatchNorm into the (tiny, kept-resident) conv weight/bias.
    # The folded weight stays f32 even for bf16 activations (the dot promotes
    # the x tile in-register), so the folding never loses precision.
    scale = bn_gamma.astype(jnp.float32) / jnp.sqrt(bn_var.astype(jnp.float32) + eps)
    wm = conv_weight.reshape(C2, C4).astype(jnp.float32) * scale[:, None]
    bias = (bn_beta.astype(jnp.float32) - bn_mean.astype(jnp.float32) * scale).reshape(C2, 1)

    out_flat = pl.pallas_call(
        _focus_conv_bn_mish_kernel,
        out_shape=jax.ShapeDtypeStruct((N, C2, Pp), out_dtype),
        grid_spec=pltpu.PrefetchScalarGridSpec(
            num_scalar_prefetch=0,
            grid=(N, Pp // tp),
            in_specs=[
                pl.BlockSpec((None, C4, tp), lambda n, i: (n, 0, i)),
                pl.BlockSpec((C2, C4), lambda n, i: (0, 0)),
                pl.BlockSpec((C2, 1), lambda n, i: (0, 0)),
            ],
            out_specs=pl.BlockSpec((None, C2, tp), lambda n, i: (n, 0, i)),
        ),
        compiler_params=pltpu.CompilerParams(
            # Both grid axes are independent -> megacore may shard either.
            # TODO(synk): on v7x consider pltpu.CORE_PARALLEL on the pixel axis to
            # guarantee both TensorCores are engaged for single-image batches.
            dimension_semantics=("parallel", "parallel"),
            # v5e's scoped-VMEM default is only 16 MiB; raise it explicitly so
            # the ~4 MiB/step double-buffered tiles have headroom everywhere.
            vmem_limit_bytes=32 * 1024 * 1024,
        ),
    )(xs, wm, bias)

    out = out_flat[:, :, :P] if Pp != P else out_flat
    return out.reshape(N, C2, H2, W2)


def _reference_forward(x, conv_weight, bn_gamma, bn_beta, bn_mean, bn_var, eps=1e-5):
    """Pure-JAX reference for correctness checking."""
    xs = jnp.concatenate(
        [x[..., ::2, ::2], x[..., 1::2, ::2], x[..., ::2, 1::2], x[..., 1::2, 1::2]],
        axis=1,
    )
    y = jnp.einsum("nchw,oc->nohw", xs, conv_weight.reshape(conv_weight.shape[0], -1))
    scale = bn_gamma / jnp.sqrt(bn_var + eps)
    bias = bn_beta - bn_mean * scale
    y = y * scale[None, :, None, None] + bias[None, :, None, None]
    return y * jnp.tanh(jax.nn.softplus(y))


if __name__ == "__main__":
    # Small deterministic example consistent with Focus(c1=4, c2=8, k=1, s=1)
    N, C1, H, W = 2, 4, 16, 16
    C2 = 8
    key = jax.random.PRNGKey(0)
    k_x, k_w, k_g, k_b, k_m, k_v = jax.random.split(key, 6)

    x = jax.random.normal(k_x, (N, C1, H, W), dtype=jnp.float32)
    # nn.Conv2d(c1*4, c2, k=1, bias=False) -> weight shape (C2, 4*C1, 1, 1)
    conv_weight = 0.1 * jax.random.normal(k_w, (C2, 4 * C1, 1, 1), dtype=jnp.float32)
    # BatchNorm2d(c2) parameters / running stats (eval mode), deterministic
    bn_gamma = 1.0 + 0.1 * jax.random.normal(k_g, (C2,), dtype=jnp.float32)
    bn_beta = 0.1 * jax.random.normal(k_b, (C2,), dtype=jnp.float32)
    bn_mean = 0.1 * jax.random.normal(k_m, (C2,), dtype=jnp.float32)
    bn_var = jnp.abs(1.0 + 0.1 * jax.random.normal(k_v, (C2,), dtype=jnp.float32))

    ref = _reference_forward(x, conv_weight, bn_gamma, bn_beta, bn_mean, bn_var)

    # f32 path: tolerance accounts for the approximate EUP reciprocal in the
    # Mish epilogue (relative error in the output bounded by the recip error).
    out = focus_forward(x, conv_weight, bn_gamma, bn_beta, bn_mean, bn_var)
    out = jax.block_until_ready(out)
    assert out.shape == (N, C2, H // 2, W // 2)
    assert jnp.allclose(out, ref, atol=2e-2, rtol=2e-2)

    # bf16 path (halves BOTH HBM streams on real shapes): loose check.
    out_bf16 = focus_forward(x, conv_weight, bn_gamma, bn_beta, bn_mean, bn_var,
                             compute_dtype=jnp.bfloat16)
    out_bf16 = jax.block_until_ready(out_bf16)
    assert out_bf16.dtype == jnp.bfloat16
    assert jnp.allclose(out_bf16.astype(jnp.float32), ref, atol=1e-1, rtol=1e-1)

    print("KERNEL_OK")
</pallas_src>

<mosaic_0001>
module attributes {stable_mosaic.version = 11 : i64} {
  func.func @_focus_conv_bn_mish_kernel(%arg0: i32, %arg1: i32, %arg2: memref<1x16x128xf32, #tpu.memory_space<vmem>>, %arg3: memref<8x16xf32, #tpu.memory_space<vmem>>, %arg4: memref<8x1xf32, #tpu.memory_space<vmem>>, %arg5: memref<1x8x128xf32, #tpu.memory_space<vmem>>) attributes {dimension_semantics = [#tpu.dimension_semantics<parallel>, #tpu.dimension_semantics<parallel>], iteration_bounds = array<i64: 2, 1>, scalar_prefetch = 0 : i64, scratch_operands = 0 : i64, tpu.core_type = #tpu.core_type<tc>, window_params = [{transform_indices = @transform_0, window_bounds = array<i64: 1, 16, 128>}, {pipeline_mode = #tpu.pipeline_mode<synchronous>, transform_indices = @transform_1, window_bounds = array<i64: 8, 16>}, {pipeline_mode = #tpu.pipeline_mode<synchronous>, transform_indices = @transform_2, window_bounds = array<i64: 8, 1>}, {transform_indices = @transform_3, window_bounds = array<i64: 1, 8, 128>}]} {
    %c0 = arith.constant 0 : index
    %c0_0 = arith.constant 0 : index
    %c0_1 = arith.constant 0 : index
    %0 = vector.load %arg2[%c0, %c0_0, %c0_1] : memref<1x16x128xf32, #tpu.memory_space<vmem>>, vector<1x16x128xf32>
    %1 = vector.shape_cast %0 : vector<1x16x128xf32> to vector<16x128xf32>
    %c0_2 = arith.constant 0 : index
    %c0_3 = arith.constant 0 : index
    %2 = vector.load %arg3[%c0_2, %c0_3] : memref<8x16xf32, #tpu.memory_space<vmem>>, vector<8x16xf32>
    %cst = arith.constant dense<0.000000e+00> : vector<8x128xf32>
    %3 = tpu.matmul %2, %1, %cst {dimension_numbers = #tpu.dot_dimension_numbers<[1], [0], [0], [1], [0, 0, 1, 1], [], []>} : vector<8x16xf32>, vector<16x128xf32>, vector<8x128xf32> -> vector<8x128xf32>
    %c0_4 = arith.constant 0 : index
    %c0_5 = arith.constant 0 : index
    %4 = vector.load %arg4[%c0_4, %c0_5] : memref<8x1xf32, #tpu.memory_space<vmem>>, vector<8x1xf32>
    %5 = vector.broadcast %4 : vector<8x1xf32> to vector<8x128xf32>
    %6 = arith.addf %3, %5 : vector<8x128xf32>
    %cst_6 = arith.constant 2.000000e+01 : f32
    %7 = vector.broadcast %cst_6 : f32 to vector<8x128xf32>
    %8 = arith.minimumf %6, %7 : vector<8x128xf32>
    %9 = math.exp %8 : vector<8x128xf32>
    %cst_7 = arith.constant 1.000000e+00 : f32
    %10 = vector.broadcast %cst_7 : f32 to vector<8x128xf32>
    %11 = arith.addf %10, %9 : vector<8x128xf32>
    %12 = arith.mulf %11, %11 : vector<8x128xf32>
    %cst_8 = arith.constant 1.000000e+00 : f32
    %13 = vector.broadcast %cst_8 : f32 to vector<8x128xf32>
    %14 = arith.subf %12, %13 : vector<8x128xf32>
    %cst_9 = arith.constant 1.000000e+00 : f32
    %15 = vector.broadcast %cst_9 : f32 to vector<8x128xf32>
    %16 = arith.addf %12, %15 : vector<8x128xf32>
    %17 = tpu.reciprocal %16 {approx = true} : vector<8x128xf32> -> vector<8x128xf32>
    %18 = arith.mulf %14, %17 : vector<8x128xf32>
    %19 = arith.mulf %6, %18 : vector<8x128xf32>
    %c0_10 = arith.constant 0 : index
    %c0_11 = arith.constant 0 : index
    %c0_12 = arith.constant 0 : index
    %20 = vector.load %arg5[%c0_10, %c0_11, %c0_12] : memref<1x8x128xf32, #tpu.memory_space<vmem>>, vector<1x8x128xf32>
    %21 = vector.shape_cast %20 : vector<1x8x128xf32> to vector<8x128xf32>
    %22 = vector.shape_cast %19 : vector<8x128xf32> to vector<1x8x128xf32>
    tpu.vector_store %arg5[%c0_10, %c0_11, %c0_12], %22 {strides = array<i32>} : memref<1x8x128xf32, #tpu.memory_space<vmem>>, vector<1x8x128xf32>,
    return
  }
  func.func @transform_0(%arg0: i32, %arg1: i32) -> (i32, i32, i32) {
    %c0_i32 = arith.constant 0 : i32
    %c0_i32_0 = arith.constant 0 : i32
    return %arg0, %c0_i32, %arg1 : i32, i32, i32
  }
  func.func @transform_1(%arg0: i32, %arg1: i32) -> (i32, i32) {
    %c0_i32 = arith.constant 0 : i32
    %c0_i32_0 = arith.constant 0 : i32
    %c0_i32_1 = arith.constant 0 : i32
    return %c0_i32, %c0_i32_0 : i32, i32
  }
  func.func @transform_2(%arg0: i32, %arg1: i32) -> (i32, i32) {
    %c0_i32 = arith.constant 0 : i32
    %c0_i32_0 = arith.constant 0 : i32
    %c0_i32_1 = arith.constant 0 : i32
    return %c0_i32, %c0_i32_0 : i32, i32
  }
  func.func @transform_3(%arg0: i32, %arg1: i32) -> (i32, i32, i32) {
    %c0_i32 = arith.constant 0 : i32
    %c0_i32_0 = arith.constant 0 : i32
    return %arg0, %c0_i32, %arg1 : i32, i32, i32
  }
}

</mosaic_0001>

<bundles_post_ra>
// kernel: tpu_custom_call.1
= control target key start
LH: loop header
LB: loop body
LE: loop exit
PB: predicated region body
PF: predicated region fallthrough
CT: control target
= control target key end

     0   :  { %8 = vsyncpa [#allocation3], 0  ;;  %s701_s0 = inlined_call_operand.hbm [shape: f32[2,16,128], index: 0, kind: input, shape index: {}]   ;;  %s702_s1 = inlined_call_operand.vmem [shape: f32[8,16], index: 1, kind: input, shape index: {}]   ;;  %s703_s2 = inlined_call_operand.vmem [shape: f32[8,1], index: 2, kind: input, shape index: {}]   ;;  %s704_s3 = inlined_call_operand.hbm [shape: f32[2,8,128], index: 3, kind: output, shape index: {}]  }
   0x1   :  { %10 = vsyncpa [#allocation3 + $0x1], 0 }
   0x2   :  { %11 = vsyncpa [#allocation4], 0 }
   0x3   :  { %13 = vsyncpa [#allocation4 + $0x1], 0  ;;  %s574_s12 = smov 0   ;;  %s576_s13 = smov 0  }
   0x4   :  { %s578_s14 = smov 0   ;;  %s580_s15 = smov 0  }
   0x5   :  { %s582_s16 = smov 0   ;;  %s584_s17 = smov 0  }
   0x6 LB: > { %s350_s18 = sadd.s32 4294967295, %s549_s17   ;;  %s351_s19 = sadd.s32 4294967294, %s549_s17   ;;  %s549_s17 = sphi %s584_s17, %s19_s17   ;;  %s545_s16 = sphi %s582_s16, %s713_s16   ;;  %s541_s15 = sphi %s580_s15, %s712_s15   ;;  %s537_s14 = sphi %s578_s14, %s711_s14   ;;  %s533_s13 = sphi %s576_s13, %s710_s13   ;;  %s529_s12 = sphi %s574_s12, %s709_s12  }
   0x7   : > { %s31_s20 = sadd.s32 1, %s545_s16  ;;  %s40_s21 = sadd.s32 1, %s537_s14 }
   0x8   : > { %p33_p0 = scmp.ge.s32.totalorder %s31_s20, 2  ;;  %p47_p1 = scmp.ne.s32.totalorder %s537_s14, %s533_s13 }
   0x9   : > { %p48_p2 = scmp.eq.s32.totalorder %s549_s17, 0  ;;  %p53_p3 = scmp.ne.s32.totalorder %s533_s13, %s529_s12 }
   0xa   : > { %s715_s20 = smov (%p33_p0, %s31_s20), 0  ;;  %p54_p5 = scmp.eq.s32.totalorder %s350_s18, 0 }
   0xb   : > { %p615_p4 = por %p48_p2, %p47_p1  ;;  %s35_s23 = ssub.s32 %s545_s16, %s715_s20 }
   0xc   : > { %p121_p6 = scmp.eq.s32.totalorder %s350_s18, 1  ;;  %p38_p7 = scmp.eq.s32.totalorder %s35_s23, 0 }
   0xd   : > { %p621_p8 = por %p54_p5, %p53_p3  ;;  %p127_p10 = scmp.eq.s32.totalorder %s351_s19, 1 }
   0xe   : > { %p625_p9 = por %p121_p6, %p47_p1  ;;  %p353_p12 = scmp.ge.s32.totalorder %s549_s17, 2 }
   0xf   : > { %s630_s26 = scalar_select %p38_p7, %s537_s14, %s40_s21  }
  0x10   : > { %p632_p11 = por %p127_p10, %p53_p3  ;;  %p379_p13 = scmp.lt.s32.totalorder %s549_s17, 2 }
  0x11   : > { %s153_s28 = sand.u32 1, %s537_s14   ;;  %s366_s30 = sshll.u32 %s545_s16, 4 }
  0x12   : > { %s354_s29 = sshll.u32 %s153_s28, 4  ;;  %s163_s6 = scalar_lea.hbm %s701_s0, %s366_s30 }
  0x13   : > { %s157_s7 = scalar_lea.vmem [#allocation2], %s354_s29  ;;  %s164_s9 = sshll.u32 %s163_s6, 4  ;;  %s165_s9 = int_to_ptr.hbm [resolvable:$true] %s164_s9 }
  0x14   : > { %s166_s8 = sshll.u32 %s157_s7, 4  ;;  %p372_p0 = pnand %p379_p13, %p615_p4  ;;  %s167_s8 = int_to_ptr.vmem [resolvable:$true] %s166_s8 }
  0x15   : > { %p357_p1 = scmp.ge.s32.totalorder %s549_s17, 1  ;;  %s154_s10 = scalar_lea.sflag [#allocation3], %s153_s28 }
  0x16   : > { %s551_s11 = smov 128   ;;  %s552_s18 = smov 8  }
  0x17   : > { %374 = dma.hbm_to_vmem [thread:$0]  (!%p372_p0), %s165_s9, 256, %s167_s8, %s154_s10, %s551_s11, %s551_s11, %s552_s18  }
  0x18   : > { %p174_p2 = scmp.lt.s32.totalorder %s549_s17, 3 }
  0x1a   : > { %p175_p3 = pnand %p357_p1, %p174_p2 }
  0x1b   : > { %s648_s19 = sand.u32 (!%p175_p3), 1, %s533_s13  }
  0x1c   : > { %178 = sbr.rel (%p175_p3) target bundleno = 197 (0xc5), region = 32  ;;  %s358_s21 = sshll.u32 (!%p175_p3), %s648_s19, 4 }
  0x1d   : > { %s181_s23 = scalar_lea.sflag (!%p175_p3), [#allocation3], %s648_s19  ;;  %s184_s29 = scalar_lea.vmem (!%p175_p3), [#allocation2], %s358_s21 }
  0x21   : > { %520 = dma.done.wait (%p621_p8), %s181_s23, 256  }
  0x22   : > { %522 = vsyncadd (%p621_p8), %s181_s23, 4294967040  ;;  %v553_v0 = vmov 0   ;;  %v209_v1 = vld [vmem:[%s184_s29 + $0x8] sm:$0xff]  ;;  %v208_v2 = vld [vmem:[%s184_s29] sm:$0xff]  ;;  %vm217_vm0 = vcmask 130048   ;;  %s359_s24 = sshll.u32 %s648_s19, 3 }
  0x23   : > { %432 = vset.pattern.permute.xlu0 %v553_v0  ;;  %235 = vmatpush.msra.mxu0 %v209_v1  ;;  %v210_v3 = vld [vmem:[%s702_s1] sm:$0xff]  ;;  %s363_s5 = sshll.u32 %s541_s15, 3  ;;  %s207_s9 = scalar_lea.vmem [#allocation5], %s359_s24 }
  0x24   : > { %v211_v4 = vld [vmem:[%s703_s2] sm:$0xff]  ;;  %s264_s8 = scalar_lea.hbm %s704_s3, %s363_s5  ;;  %s266_s10 = sshll.u32 %s207_s9, 4  ;;  %s267_s10 = int_to_ptr.vmem [resolvable:$true] %s266_s10 }
  0x25   : > { %214 = vperm.xlu0 %432, %v211_v4   ;;  %236 = vmatpush.msra.mxu0 %v208_v2  ;;  %s268_s11 = sshll.u32 %s264_s8, 4  ;;  %s253_s18 = scalar_lea.sflag [#allocation4], %s648_s19  ;;  %s269_s11 = int_to_ptr.hbm [resolvable:$true] %s268_s11 }
  0x26   : > { %360 = vmatmul.msk.f32.vlgmr.msra.gmra.mxu0 %vm217_vm0, %v210_v3  ;;  %s481_s21 = sshra.s32 %s269_s11, 4  ;;  %s487_s22 = scalar_lea.hbm %s704_s3, 16  ;;  %s482_s21 = int_to_ptr.hbm [resolvable:$true] %s481_s21 }
  0x27   : > { %s483_s23 = scalar_lea.hbm %s482_s21, 8  ;;  %p488_p7 = scmp.lt.s32.totalorder %s482_s21, %s704_s3 }
  0x28   : > { %p484_p4 = scmp.ne.s32.totalorder %s482_s21, %s483_s23  ;;  %p489_p8 = scmp.lt.s32.totalorder %s487_s22, %s483_s23 }
  0x2a   : > { %p485_p5 = pnand %p484_p4, %p625_p9  ;;  %p490_p10 = por %p489_p8, %p488_p7 }
  0x2c   : > { %p486_p6 = pneg %p485_p5 }
  0x2e   : > { %p491_p13 = pnand %p490_p10, %p486_p6 }
  0x97   : > { %v215_v5 = vpop.permute.xlu0 %214 }
  0xa3   : > { %v238_v6 = vpop.f32.mrf.mxu0 }
  0xa4   : > { %v239_v7 = vadd.f32 %v238_v6, %v215_v5 }
  0xa6   : > { %v241_v8 = vmin.f32 %v239_v7, 20.0 }
  0xa8   : > { %v242_v9 = vmul.f32 1.442695, %v241_v8 }
  0xaa   : > { %433 = vpow2.f32 %v242_v9 }
  0xb0   : > { %v434_v10 = vpop.eup %433 }
  0xb1   : > { %v244_v11 = vadd.f32 1.0, %v434_v10 }
  0xb3   : > { %v245_v12 = vmul.f32 %v244_v11, %v244_v11 }
  0xb5   : > { %v247_v13 = vadd.f32 1.0, %v245_v12  ;;  %v361_v14 = vadd.f32 -1.0, %v245_v12 }
  0xb7   : > { %435 = vrcp.f32 %v247_v13 }
  0xbd   : > { %v436_v15 = vpop.eup %435 }
  0xbe   : > { %v249_v16 = vmul.f32 %v436_v15, %v361_v14 }
  0xc0   : > { %v250_v17 = vmul.f32 %v249_v16, %v239_v7 }
  0xc2   : > { %251 = vst [vmem:[%s207_s9] sm:$0xff] %v250_v17 }
  0xc3   : > { %494 = shalt.err (!%p491_p13)
}
  0xc4   : > { %369 = dma.vmem_to_hbm [thread:$0]  (%p625_p9), %s267_s10, 128, %s269_s11, %s253_s18  }
  0xc5 PF: > { %s280_s19 = sand.u32 1, %s529_s12   ;;  %p376_p0 = pnand %p353_p12, %p632_p11 }
  0xc6   : > { %s281_s4 = scalar_lea.sflag [#allocation4], %s280_s19 }
  0xc7   : > { %p377_p1 = pneg %p376_p0 }
  0xc9   : > { %524 = dma.done.wait (%p377_p1), %s281_s4, 128  }
  0xca   : > { %526 = vsyncadd (%p377_p1), %s281_s4, 4294967168  ;;  %s19_s17 = sadd.s32 1, %s549_s17   ;;  %s709_s12 = smov %s533_s13 }
  0xcb   : > { %p16_p2 = scmp.ge.s32.totalorder %s19_s17, 4   ;;  %s710_s13 = smov %s537_s14 }
  0xcc   : > { %s711_s14 = smov %s630_s26  ;;  %s712_s15 = smov %s545_s16 }
  0xcd   : > { %s713_s16 = smov %s715_s20  ;;  %18 = sbr.rel (!%p16_p2) target bundleno = 6 (0x6), region = 77 }
  0xd2   :  { %287 = vsyncpa [#allocation3], 1 }
  0xd3   :  { %289 = vsyncpa [#allocation3 + $0x1], 1 }
  0xd4   :  { %290 = vsyncpa [#allocation4], 1 }
  0xd5   :  { %292 = vsyncpa [#allocation4 + $0x1], 1 }

</bundles_post_ra>
